<compile_context>
chip_gen: v7x
topology: tpu7x:2x2x1
jax: 0.10.0
libtpu: 0.0.40
codegen_flags: <defaults>
</compile_context>

<pallas_src>
import jax
import jax.numpy as jnp
from jax.experimental import pallas as pl
from jax.experimental.pallas import tpu as pltpu


# ----------------------------------------------------------------------------
# Exact port of the abstract base class semantics.
# ----------------------------------------------------------------------------
class BasePredictor:
    """JAX/Pallas mirror of the abstract PyTorch BasePredictor."""

    def __init__(self):
        # nn.Module.__init__ creates no parameters here; nothing to initialize.
        pass

    def forward(self, *args, **kwargs):
        raise NotImplementedError(
            f"Method of abstract class for '{type(self).__name__}' was used"
        )

    def get_importances(self, *args, **kwargs):
        raise NotImplementedError(
            f"Method of abstract class for '{type(self).__name__}' was used"
        )

    # TODO(synk): abstract class defines no forward computation; concrete
    # subclasses implement their hot path on top of the kernel below.


# ----------------------------------------------------------------------------
# Pallas smoke-test kernel (identity copy) — the plumbing a concrete subclass
# would reuse.  Lane-dense slab, row-tiled parallel grid.
# ----------------------------------------------------------------------------
def _identity_kernel(x_ref, o_ref):
    o_ref[...] = x_ref[...]


def pallas_identity(
    x,
    *,
    lanes: int = 512,                 # multiple of 128 -> unmasked full-lane stores
    max_tile_bytes: int = 4 << 20,    # ~4 MiB/tile * 4 buffers -> fits v7x/v5e budgets
    alias_input: bool = False,        # demonstrate input_output_aliases={0: 0}
):
    """Identity pass-through implemented as a tiled, pipelined Pallas TPU kernel.

    Any-rank input; internally repacked into a lane-dense (rows, lanes) slab,
    processed in row tiles, then un-padded back to the original shape.
    """
    orig_shape = x.shape
    itemsize = jnp.dtype(x.dtype).itemsize
    total = x.size

    # --- repack into a lane-dense slab -------------------------------------
    flat = x.reshape(-1)
    rows = pl.cdiv(total, lanes)                       # rows of `lanes` elements

    # Sublane packing factor: 8 for 4-byte, 16 for 2-byte, 32 for 1-byte dtypes.
    sub = max(8, 32 // itemsize)

    # Largest row-tile whose (TR, lanes) block stays under max_tile_bytes,
    # rounded down to the sublane packing; at least one packed group.
    tr_cap = max(sub, (max_tile_bytes // (lanes * itemsize)) // sub * sub)
    tr = min(tr_cap, pl.cdiv(rows, sub) * sub)

    rows_padded = pl.cdiv(rows, tr) * tr
    padded_total = rows_padded * lanes
    if padded_total != total:
        flat = jnp.pad(flat, (0, padded_total - total))
    x2d = flat.reshape(rows_padded, lanes)

    grid = rows_padded // tr
    bytes_accessed = 2 * padded_total * itemsize       # read + write (mem-bound)

    out2d = pl.pallas_call(
        _identity_kernel,
        out_shape=jax.ShapeDtypeStruct((rows_padded, lanes), x2d.dtype),
        grid=(grid,),
        in_specs=[pl.BlockSpec((tr, lanes), lambda i: (i, 0))],
        out_specs=pl.BlockSpec((tr, lanes), lambda i: (i, 0)),
        compiler_params=pltpu.CompilerParams(
            dimension_semantics=("parallel",),          # shard tiles across TCs on v7x
            vmem_limit_bytes=64 << 20,                  # explicit headroom (v5e default is 16 MiB)
        ),
        cost_estimate=pl.CostEstimate(
            flops=0, transcendentals=0, bytes_accessed=bytes_accessed
        ),
        input_output_aliases=({0: 0} if alias_input else {}),
    )(x2d)

    return out2d.reshape(-1)[:total].reshape(orig_shape)


if __name__ == "__main__":
    key = jax.random.PRNGKey(0)
    # Small NCHW-like input consistent with what a concrete predictor would see.
    x = jax.random.normal(key, (2, 4, 16, 16), dtype=jnp.float32)

    # 1) Verify abstract-class semantics (forward / get_importances raise).
    predictor = BasePredictor()
    raised_fwd = False
    try:
        predictor.forward(x)
    except NotImplementedError:
        raised_fwd = True
    raised_imp = False
    try:
        predictor.get_importances()
    except NotImplementedError:
        raised_imp = True
    assert raised_fwd and raised_imp, "abstract-class semantics not reproduced"

    # 2) Single-tile path (small input -> one grid step, lane-dense slab).
    y = pallas_identity(x)
    jax.block_until_ready(y)
    assert y.shape == x.shape and y.dtype == x.dtype
    assert bool(jnp.allclose(y, x)), "identity kernel mismatch (single tile)"

    # 3) Multi-tile path: shrink the per-tile budget to force grid > 1 and
    #    exercise the pipelined, parallel row tiling.
    x_big = jax.random.normal(jax.random.PRNGKey(1), (4, 8, 64, 64), jnp.float32)
    y_big = pallas_identity(x_big, max_tile_bytes=64 * 1024)
    jax.block_until_ready(y_big)
    assert bool(jnp.allclose(y_big, x_big)), "identity kernel mismatch (multi tile)"

    # 4) Aliased (in-place writeback) variant demonstrating input_output_aliases.
    y_alias = pallas_identity(x, alias_input=True)
    jax.block_until_ready(y_alias)
    assert bool(jnp.allclose(y_alias, x)), "identity kernel mismatch (aliased)"

    print("KERNEL_OK")
</pallas_src>

<mosaic_0001>
module attributes {stable_mosaic.version = 11 : i64} {
  func.func @_identity_kernel(%arg0: i32, %arg1: memref<8x512xf32, #tpu.memory_space<vmem>>, %arg2: memref<8x512xf32, #tpu.memory_space<vmem>>) attributes {dimension_semantics = [#tpu.dimension_semantics<parallel>], iteration_bounds = array<i64: 1>, scalar_prefetch = 0 : i64, scratch_operands = 0 : i64, tpu.core_type = #tpu.core_type<tc>, window_params = [{transform_indices = @transform_0, window_bounds = array<i64: 8, 512>}, {transform_indices = @transform_1, window_bounds = array<i64: 8, 512>}]} {
    %c0 = arith.constant 0 : index
    %c0_0 = arith.constant 0 : index
    %0 = vector.load %arg1[%c0, %c0_0] : memref<8x512xf32, #tpu.memory_space<vmem>>, vector<8x512xf32>
    %c0_1 = arith.constant 0 : index
    %c0_2 = arith.constant 0 : index
    %1 = vector.load %arg2[%c0_1, %c0_2] : memref<8x512xf32, #tpu.memory_space<vmem>>, vector<8x512xf32>
    tpu.vector_store %arg2[%c0_1, %c0_2], %0 {strides = array<i32>} : memref<8x512xf32, #tpu.memory_space<vmem>>, vector<8x512xf32>,
    return
  }
  func.func @transform_0(%arg0: i32) -> (i32, i32) {
    %c0_i32 = arith.constant 0 : i32
    %c0_i32_0 = arith.constant 0 : i32
    return %arg0, %c0_i32 : i32, i32
  }
  func.func @transform_1(%arg0: i32) -> (i32, i32) {
    %c0_i32 = arith.constant 0 : i32
    %c0_i32_0 = arith.constant 0 : i32
    return %arg0, %c0_i32 : i32, i32
  }
}

</mosaic_0001>

<bundles_post_ra>
// kernel: tpu_custom_call.1
= control target key start
LH: loop header
LB: loop body
LE: loop exit
PB: predicated region body
PF: predicated region fallthrough
CT: control target
= control target key end

     0   :  { %6 = vsyncpa [#allocation3], 0  ;;  %s130_s0 = inlined_call_operand.hbm [shape: f32[8,512], index: 0, kind: input, shape index: {}]   ;;  %s131_s1 = inlined_call_operand.hbm [shape: f32[8,512], index: 1, kind: output, shape index: {}]  }
   0x1   :  { %7 = vsyncpa [#allocation4], 0  ;;  %s94_s6 = smov [#allocation2]   ;;  %s46_s10 = scalar_lea.hbm %s130_s0, 512 }
   0x2   :  { %s14_s7 = sshll.u32 %s94_s6, 4  ;;  %p47_p0 = scmp.ne.s32.totalorder %s130_s0, %s46_s10  ;;  %s15_s7 = int_to_ptr.vmem [resolvable:$true] %s14_s7 }
   0x3   :  { %p50_p1 = scmp.lt.u32.totalorder %s46_s10, %s130_s0 }
   0x5   :  { %p52_p2 = pnand %p50_p1, %p47_p0 }
   0x7   :  { %55 = shalt.err (!%p52_p2)
}
   0x8   :  { %s56_s15 = scalar_lea.vmem %s15_s7, 512  ;;  %p61_p4 = scmp.lt.s32.totalorder %s15_s7, %s15_s7 }
   0x9   :  { %p57_p3 = scmp.ne.s32.totalorder %s15_s7, %s56_s15  ;;  %p62_p5 = scmp.lt.s32.totalorder %s56_s15, %s56_s15 }
   0xb   :  { %p63_p6 = por %p62_p5, %p61_p4 }
   0xd   :  { %p64_p7 = pnand %p63_p6, %p57_p3 }
   0xf   :  { %67 = shalt.err (!%p64_p7)
}
  0x10   :  { %17 = dma.hbm_to_vmem [thread:$0]  %s130_s0, 512, %s15_s7, [#allocation3]  }
  0x11   :  { %90 = dma.done.wait [#allocation3], 512  }
  0x12   :  { %91 = vsyncadd [#allocation3], 4294966784  ;;  %s95_s18 = smov [#allocation5]   ;;  %v21_v0 = vld [vmem:[#allocation2] sm:$0xff]  ;;  %v22_v1 = vld [vmem:[#allocation2 + $0x8] sm:$0xff] }
  0x13   :  { %s35_s19 = sshll.u32 %s95_s18, 4  ;;  %v23_v2 = vld [vmem:[#allocation2 + $0x10] sm:$0xff]  ;;  %25 = vst [vmem:[#allocation5] sm:$0xff] %v21_v0  ;;  %26 = vst [vmem:[#allocation5 + $0x8] sm:$0xff] %v22_v1  ;;  %v24_v3 = vld [vmem:[#allocation2 + $0x18] sm:$0xff]  ;;  %s36_s19 = int_to_ptr.vmem [resolvable:$true] %s35_s19 }
  0x14   :  { %27 = vst [vmem:[#allocation5 + $0x10] sm:$0xff] %v23_v2  ;;  %28 = vst [vmem:[#allocation5 + $0x18] sm:$0xff] %v24_v3  ;;  %s68_s20 = scalar_lea.vmem %s36_s19, 512  ;;  %p73_p9 = scmp.lt.s32.totalorder %s36_s19, %s36_s19 }
  0x15   :  { %p69_p8 = scmp.ne.s32.totalorder %s36_s19, %s68_s20  ;;  %p74_p10 = scmp.lt.s32.totalorder %s68_s20, %s68_s20 }
  0x17   :  { %p75_p11 = por %p74_p10, %p73_p9 }
  0x19   :  { %p76_p12 = pnand %p75_p11, %p69_p8 }
  0x1b   :  { %79 = shalt.err (!%p76_p12)
}
  0x1c   :  { %s80_s22 = scalar_lea.hbm %s131_s1, 512 }
  0x1d   :  { %p81_p13 = scmp.ne.s32.totalorder %s131_s1, %s80_s22  ;;  %p84_p0 = scmp.lt.u32.totalorder %s80_s22, %s131_s1 }
  0x1f   :  { %p86_p1 = pnand %p84_p0, %p81_p13 }
  0x21   :  { %89 = shalt.err (!%p86_p1)
}
  0x22   :  { %38 = dma.vmem_to_hbm [thread:$0]  %s36_s19, 512, %s131_s1, [#allocation4]  }
  0x23   :  { %92 = dma.done.wait [#allocation4], 512  }
  0x24   :  { %93 = vsyncadd [#allocation4], 4294966784 }
  0x25   :  { %42 = vsyncpa [#allocation3], 1 }
  0x26   :  { %43 = vsyncpa [#allocation4], 1 }

</bundles_post_ra>
